<compile_context>
chip_gen: v7x
topology: tpu7x:2x2x1
jax: 0.10.0
libtpu: 0.0.40
codegen_flags: <defaults>
</compile_context>

<pallas_src>
import functools

import jax
import jax.numpy as jnp
from jax.experimental import pallas as pl
from jax.experimental.pallas import tpu as pltpu


# ----------------------------------------------------------------------------
# Small helpers
# ----------------------------------------------------------------------------
def _cdiv(a, b):
    return -(-a // b)


def _round_up(x, m):
    return ((x + m - 1) // m) * m


def _vmem_budget():
    """(vmem_limit_bytes, input+scratch budget) sized per TPU generation."""
    cap = 64 << 20  # conservative default (v7x per-TC VMEM)
    try:
        info = pltpu.get_tpu_info()
        cap = int(getattr(info, "vmem_capacity_bytes", cap))
    except Exception:
        pass
    limit = max(24 << 20, min(cap - (16 << 20), 64 << 20))  # 64 MiB on v5e/v6e, 48 MiB on v7x
    budget = int(limit * 0.75)                               # headroom for pipeline internals
    return int(limit), int(budget)


def _pick_tile_b(b, stream_bytes_per_row, scratch_bytes_per_row, budget_bytes,
                 max_tile=16384):
    """Largest batch tile whose double-buffered inputs + intermediates fit the budget."""
    if b <= 8:
        return int(b)
    denom = 2 * max(int(stream_bytes_per_row), 1) + max(int(scratch_bytes_per_row), 0)
    tile = budget_bytes // denom
    tile = min(tile, max_tile, b)
    if tile >= b:
        return int(b)          # single full-batch block (full dims are always legal)
    tile = max(8, (tile // 8) * 8)
    return int(tile)


# ----------------------------------------------------------------------------
# In-kernel math
# ----------------------------------------------------------------------------
def _row_mask(tile_rows, total_rows, tiles_per_core):
    """(tile_rows, 1) bool: True for rows that exist in the global array."""
    tile_idx = pl.program_id(0) * tiles_per_core + pl.program_id(1)
    base = tile_idx * tile_rows
    idx = base + jax.lax.broadcasted_iota(jnp.int32, (tile_rows, 1), 0)
    return idx < total_rows


def _ce_tile_sum(x, tgt, epsilon, mask):
    """Sum over the tile of label-smoothed CE.

    loss_row = lse(x) - sum_j w_j * x_j  with  w_j = eps/C (+ (1-eps) at the target).
    exp stays in the input dtype (bf16 EUP on v6e/v7x); accumulation is f32.
    """
    tile_rows, num_classes = x.shape
    m = jnp.max(x, axis=1, keepdims=True)
    e = jnp.exp(x - m)
    sum_e = jnp.sum(e.astype(jnp.float32), axis=1, keepdims=True)
    lse = jnp.log(sum_e) + m.astype(jnp.float32)

    col = jax.lax.broadcasted_iota(jnp.int32, (tile_rows, num_classes), 1)
    base_w = epsilon / num_classes
    w = jnp.where(col == tgt, 1.0 - epsilon + base_w, base_w)
    wx = jnp.sum(w * x.astype(jnp.float32), axis=1, keepdims=True)

    loss = lse - wx                              # (T, 1)
    if mask is not None:
        loss = jnp.where(mask, loss, 0.0)        # padded rows contribute exactly 0
    return jnp.sum(loss)                         # scalar f32


def _hinge_tile_sum(v, gamma, mask):
    """Sum over the tile of max(0, gamma - var)."""
    h = jnp.maximum(gamma - v.astype(jnp.float32), 0.0)
    if mask is not None:
        h = jnp.where(mask, h, 0.0)
    return jnp.sum(h)


# ----------------------------------------------------------------------------
# Fused kernels (grid = (partials, tiles_per_core); out block is the accumulator)
# ----------------------------------------------------------------------------
def _fused_noaug_kernel(logits_ref, tgt_ref, var_ref, out_ref, *,
                        epsilon, gamma, n_rows, inv_b, inv_bf,
                        need_mask, tiles_per_core):
    i = pl.program_id(1)

    @pl.when(i == 0)
    def _():
        out_ref[...] = jnp.zeros_like(out_ref)

    mask = _row_mask(logits_ref.shape[0], n_rows, tiles_per_core) if need_mask else None

    ce = _ce_tile_sum(logits_ref[...], tgt_ref[...], epsilon, mask)
    hinge = _hinge_tile_sum(var_ref[...], gamma, mask)

    # Pre-scaled contributions (1/B, 1/(B*F) are Python floats baked at trace time).
    out_ref[...] += inv_b * ce + inv_bf * hinge


def _fused_aug_kernel(logits_ref, tgt_ref, logits_aug_ref, tgt_aug_ref, var_ref,
                      out_ref, *, epsilon, gamma, lamda_aug, lamda_fu,
                      n_rows, n_rows_aug, inv_b, inv_b_aug, inv_bf,
                      need_mask, tiles_per_core):
    i = pl.program_id(1)

    @pl.when(i == 0)
    def _():
        out_ref[...] = jnp.zeros_like(out_ref)

    mask = _row_mask(logits_ref.shape[0], n_rows, tiles_per_core) if need_mask else None
    mask_aug = (_row_mask(logits_aug_ref.shape[0], n_rows_aug, tiles_per_core)
                if need_mask else None)

    ce = _ce_tile_sum(logits_ref[...], tgt_ref[...], epsilon, mask)
    ce_aug = _ce_tile_sum(logits_aug_ref[...], tgt_aug_ref[...], epsilon, mask_aug)
    hinge = _hinge_tile_sum(var_ref[...], gamma, mask)

    out_ref[...] += (inv_b * ce
                     + (lamda_aug * inv_b_aug) * ce_aug
                     + (lamda_fu * inv_bf) * hinge)


# ----------------------------------------------------------------------------
# Wrapper mirroring ReliabilityCELoss.forward
# ----------------------------------------------------------------------------
def reliability_ce_loss(cls_outputs, targets, var,
                        cls_outputs_aug=None, targets_aug=None,
                        lamda_aug=1.0, lamda_fu=0.3, gamma=1.0, epsilon=0.1,
                        max_tile_rows=None):
    b, c = cls_outputs.shape
    f = var.shape[1]
    tgt2d = targets.astype(jnp.int32).reshape(b, 1)

    vmem_limit, budget = _vmem_budget()
    it_logits = jnp.dtype(cls_outputs.dtype).itemsize
    it_var = jnp.dtype(var.dtype).itemsize
    max_tile = 16384 if max_tile_rows is None else int(max_tile_rows)

    if cls_outputs_aug is None:
        # Lane-padded per-row bytes of the streamed blocks + block-sized f32 intermediates.
        stream = (it_logits * _round_up(c, 128) + 4 * 128 + it_var * _round_up(f, 128))
        scratch = 5 * 4 * _round_up(c, 128)
        tile_b = _pick_tile_b(b, stream, scratch, budget, max_tile)
        num_tiles = _cdiv(b, tile_b)
        num_partials = 2 if num_tiles >= 2 else 1
        tpc = _cdiv(num_tiles, num_partials)
        padded_tiles = num_partials * tpc
        need_mask = (padded_tiles * tile_b) != b
        last_tile = num_tiles - 1

        def tile_idx(p, i):
            t = p * tpc + i
            if padded_tiles > num_tiles:      # clamp the (fully-masked) padding tile
                t = jnp.minimum(t, last_tile)
            return t

        kernel = functools.partial(
            _fused_noaug_kernel,
            epsilon=float(epsilon), gamma=float(gamma),
            n_rows=b, inv_b=1.0 / b, inv_bf=1.0 / (b * f),
            need_mask=need_mask, tiles_per_core=tpc)

        out = pl.pallas_call(
            kernel,
            out_shape=jax.ShapeDtypeStruct((num_partials, 8, 128), jnp.float32),
            grid=(num_partials, tpc),
            in_specs=[
                pl.BlockSpec((tile_b, c), lambda p, i: (tile_idx(p, i), 0)),
                pl.BlockSpec((tile_b, 1), lambda p, i: (tile_idx(p, i), 0)),
                pl.BlockSpec((tile_b, f), lambda p, i: (tile_idx(p, i), 0)),
            ],
            out_specs=pl.BlockSpec((1, 8, 128), lambda p, i: (p, 0, 0)),
            compiler_params=pltpu.CompilerParams(
                dimension_semantics=("parallel", "arbitrary"),
                vmem_limit_bytes=vmem_limit),
        )(cls_outputs, tgt2d, var)
        return jnp.sum(out[:, 0, 0])

    b_aug, c_aug = cls_outputs_aug.shape
    if b_aug % b != 0:
        raise ValueError("cls_outputs_aug rows must be an integer multiple of the batch size")
    aug_k = b_aug // b
    it_aug = jnp.dtype(cls_outputs_aug.dtype).itemsize
    tgt_aug2d = targets_aug.astype(jnp.int32).reshape(b_aug, 1)

    stream = (it_logits * _round_up(c, 128) + 4 * 128 + it_var * _round_up(f, 128)
              + aug_k * (it_aug * _round_up(c_aug, 128) + 4 * 128))
    scratch = 5 * 4 * (_round_up(c, 128) + aug_k * _round_up(c_aug, 128))
    tile_b = _pick_tile_b(b, stream, scratch, budget, max_tile)
    tile_b_aug = tile_b * aug_k
    num_tiles = _cdiv(b, tile_b)
    num_partials = 2 if num_tiles >= 2 else 1
    tpc = _cdiv(num_tiles, num_partials)
    padded_tiles = num_partials * tpc
    need_mask = (padded_tiles * tile_b) != b
    last_tile = num_tiles - 1

    def tile_idx(p, i):
        t = p * tpc + i
        if padded_tiles > num_tiles:
            t = jnp.minimum(t, last_tile)
        return t

    kernel = functools.partial(
        _fused_aug_kernel,
        epsilon=float(epsilon), gamma=float(gamma),
        lamda_aug=float(lamda_aug), lamda_fu=float(lamda_fu),
        n_rows=b, n_rows_aug=b_aug,
        inv_b=1.0 / b, inv_b_aug=1.0 / b_aug, inv_bf=1.0 / (b * f),
        need_mask=need_mask, tiles_per_core=tpc)

    out = pl.pallas_call(
        kernel,
        out_shape=jax.ShapeDtypeStruct((num_partials, 8, 128), jnp.float32),
        grid=(num_partials, tpc),
        in_specs=[
            pl.BlockSpec((tile_b, c), lambda p, i: (tile_idx(p, i), 0)),
            pl.BlockSpec((tile_b, 1), lambda p, i: (tile_idx(p, i), 0)),
            pl.BlockSpec((tile_b_aug, c_aug), lambda p, i: (tile_idx(p, i), 0)),
            pl.BlockSpec((tile_b_aug, 1), lambda p, i: (tile_idx(p, i), 0)),
            pl.BlockSpec((tile_b, f), lambda p, i: (tile_idx(p, i), 0)),
        ],
        out_specs=pl.BlockSpec((1, 8, 128), lambda p, i: (p, 0, 0)),
        compiler_params=pltpu.CompilerParams(
            dimension_semantics=("parallel", "arbitrary"),
            vmem_limit_bytes=vmem_limit),
    )(cls_outputs, tgt2d, cls_outputs_aug, tgt_aug2d, var)
    return jnp.sum(out[:, 0, 0])


# ----------------------------------------------------------------------------
# Pure-JAX reference for sanity checking
# ----------------------------------------------------------------------------
def _ref(cls_outputs, targets, var, cls_outputs_aug=None, targets_aug=None,
         lamda_aug=1.0, lamda_fu=0.3, gamma=1.0, epsilon=0.1):
    def ce_mean(logits, tgt):
        num_classes = logits.shape[1]
        lp = jax.nn.log_softmax(logits, axis=1)
        oh = jax.nn.one_hot(tgt, num_classes, dtype=jnp.float32)
        sm = (1.0 - epsilon) * oh + epsilon / num_classes
        return jnp.mean(jnp.sum(-sm * lp, axis=1))

    fu = jnp.mean(jnp.maximum(gamma - var, 0.0))
    ce = ce_mean(cls_outputs, targets)
    if cls_outputs_aug is None:
        return ce + fu
    return ce + lamda_aug * ce_mean(cls_outputs_aug, targets_aug) + lamda_fu * fu


if __name__ == "__main__":
    import numpy as np

    def run_case(b, c, f, aug_k, max_tile_rows=None):
        key = jax.random.PRNGKey(0)
        k1, k2, k3, k4, k5 = jax.random.split(key, 5)
        cls_outputs = jax.random.normal(k1, (b, c), dtype=jnp.float32)
        targets = jax.random.randint(k2, (b,), 0, c, dtype=jnp.int32)
        var = jax.random.uniform(k3, (b, f), dtype=jnp.float32, minval=0.0, maxval=2.0)
        cls_outputs_aug = jax.random.normal(k4, (b * aug_k, c), dtype=jnp.float32)
        targets_aug = jax.random.randint(k5, (b * aug_k,), 0, c, dtype=jnp.int32)

        out_aug = jax.block_until_ready(
            reliability_ce_loss(cls_outputs, targets, var, cls_outputs_aug, targets_aug,
                                max_tile_rows=max_tile_rows))
        ref_aug = _ref(cls_outputs, targets, var, cls_outputs_aug, targets_aug)
        np.testing.assert_allclose(np.asarray(out_aug), np.asarray(ref_aug),
                                   rtol=1e-5, atol=1e-5)

        out_noaug = jax.block_until_ready(
            reliability_ce_loss(cls_outputs, targets, var, max_tile_rows=max_tile_rows))
        ref_noaug = _ref(cls_outputs, targets, var)
        np.testing.assert_allclose(np.asarray(out_noaug), np.asarray(ref_noaug),
                                   rtol=1e-5, atol=1e-5)

    # Single full tile, no masking.
    run_case(b=8, c=16, f=32, aug_k=2)
    # Single full-batch tile with non-multiple-of-8 rows.
    run_case(b=12, c=10, f=5, aug_k=3)
    # Forced small tiles: multi-tile grid, 2 megacore partials, ragged last tile,
    # and a clamped fully-masked padding tile (odd tile count).
    run_case(b=20, c=16, f=8, aug_k=2, max_tile_rows=8)

    print("KERNEL_OK")
</pallas_src>

<mosaic_0001>
module attributes {stable_mosaic.version = 11 : i64} {
  func.func @_fused_aug_kernel(%arg0: i32, %arg1: i32, %arg2: memref<8x16xf32, #tpu.memory_space<vmem>>, %arg3: memref<8x1xi32, #tpu.memory_space<vmem>>, %arg4: memref<16x16xf32, #tpu.memory_space<vmem>>, %arg5: memref<16x1xi32, #tpu.memory_space<vmem>>, %arg6: memref<8x32xf32, #tpu.memory_space<vmem>>, %arg7: memref<1x8x128xf32, #tpu.memory_space<vmem>>) attributes {dimension_semantics = [#tpu.dimension_semantics<parallel>, #tpu.dimension_semantics<arbitrary>], iteration_bounds = array<i64: 1, 1>, scalar_prefetch = 0 : i64, scratch_operands = 0 : i64, tpu.core_type = #tpu.core_type<tc>, window_params = [{transform_indices = @transform_0, window_bounds = array<i64: 8, 16>}, {transform_indices = @transform_1, window_bounds = array<i64: 8, 1>}, {transform_indices = @transform_2, window_bounds = array<i64: 16, 16>}, {transform_indices = @transform_3, window_bounds = array<i64: 16, 1>}, {transform_indices = @transform_4, window_bounds = array<i64: 8, 32>}, {transform_indices = @transform_5, window_bounds = array<i64: 1, 8, 128>}]} {
    %c0_i32 = arith.constant 0 : i32
    %0 = arith.cmpi eq, %arg1, %c0_i32 : i32
    %1 = arith.extui %0 : i1 to i32
    %c0_i32_0 = arith.constant 0 : i32
    %2 = arith.cmpi ne, %1, %c0_i32_0 : i32
    scf.if %2 {
      %cst_33 = arith.constant 0.000000e+00 : f32
      %71 = vector.broadcast %cst_33 : f32 to vector<1x8x128xf32>
      %c0_34 = arith.constant 0 : index
      %c0_35 = arith.constant 0 : index
      %c0_36 = arith.constant 0 : index
      %72 = vector.load %arg7[%c0_34, %c0_35, %c0_36] : memref<1x8x128xf32, #tpu.memory_space<vmem>>, vector<1x8x128xf32>
      tpu.vector_store %arg7[%c0_34, %c0_35, %c0_36], %71 {strides = array<i32>} : memref<1x8x128xf32, #tpu.memory_space<vmem>>, vector<1x8x128xf32>,
    } else {
    }
    %c0 = arith.constant 0 : index
    %c0_1 = arith.constant 0 : index
    %3 = vector.load %arg2[%c0, %c0_1] : memref<8x16xf32, #tpu.memory_space<vmem>>, vector<8x16xf32>
    %c0_2 = arith.constant 0 : index
    %c0_3 = arith.constant 0 : index
    %4 = vector.load %arg3[%c0_2, %c0_3] : memref<8x1xi32, #tpu.memory_space<vmem>>, vector<8x1xi32>
    %cst = arith.constant dense<0xFF800000> : vector<8xf32>
    %5 = vector.multi_reduction <maximumf>, %3, %cst [1] : vector<8x16xf32> to vector<8xf32>
    %6 = vector.shape_cast %5 : vector<8xf32> to vector<8x1xf32>
    %7 = vector.broadcast %6 : vector<8x1xf32> to vector<8x16xf32>
    %8 = arith.subf %3, %7 : vector<8x16xf32>
    %9 = math.exp %8 : vector<8x16xf32>
    %cst_4 = arith.constant dense<0.000000e+00> : vector<8xf32>
    %10 = vector.multi_reduction <add>, %9, %cst_4 [1] : vector<8x16xf32> to vector<8xf32>
    %11 = vector.shape_cast %10 : vector<8xf32> to vector<8x1xf32>
    %12 = math.log %11 : vector<8x1xf32>
    %13 = arith.addf %12, %6 : vector<8x1xf32>
    %14 = tpu.iota {dimensions = array<i32: 1>} : vector<8x16xi32>
    %15 = vector.broadcast %4 : vector<8x1xi32> to vector<8x16xi32>
    %16 = arith.cmpi eq, %14, %15 : vector<8x16xi32>
    %cst_5 = arith.constant 9.062500e-01 : f32
    %cst_6 = arith.constant 6.250000e-03 : f32
    %17 = vector.broadcast %cst_5 : f32 to vector<8x16xf32>
    %18 = vector.broadcast %cst_6 : f32 to vector<8x16xf32>
    %19 = arith.select %16, %17, %18 : vector<8x16xi1>, vector<8x16xf32>
    %20 = arith.mulf %19, %3 : vector<8x16xf32>
    %cst_7 = arith.constant dense<0.000000e+00> : vector<8xf32>
    %21 = vector.multi_reduction <add>, %20, %cst_7 [1] : vector<8x16xf32> to vector<8xf32>
    %22 = vector.shape_cast %21 : vector<8xf32> to vector<8x1xf32>
    %23 = arith.subf %13, %22 : vector<8x1xf32>
    %24 = vector.shape_cast %23 : vector<8x1xf32> to vector<1x8x1xf32>
    %cst_8 = arith.constant dense<0.000000e+00> : vector<1xf32>
    %25 = vector.multi_reduction <add>, %24, %cst_8 [1, 2] : vector<1x8x1xf32> to vector<1xf32>
    %26 = vector.shape_cast %25 : vector<1xf32> to vector<1x1x1xf32>
    %27 = vector.extract %26[0, 0, 0] : f32 from vector<1x1x1xf32>
    %c0_9 = arith.constant 0 : index
    %c0_10 = arith.constant 0 : index
    %28 = vector.load %arg4[%c0_9, %c0_10] : memref<16x16xf32, #tpu.memory_space<vmem>>, vector<16x16xf32>
    %c0_11 = arith.constant 0 : index
    %c0_12 = arith.constant 0 : index
    %29 = vector.load %arg5[%c0_11, %c0_12] : memref<16x1xi32, #tpu.memory_space<vmem>>, vector<16x1xi32>
    %cst_13 = arith.constant dense<0xFF800000> : vector<16xf32>
    %30 = vector.multi_reduction <maximumf>, %28, %cst_13 [1] : vector<16x16xf32> to vector<16xf32>
    %31 = vector.shape_cast %30 : vector<16xf32> to vector<16x1xf32>
    %32 = vector.broadcast %31 : vector<16x1xf32> to vector<16x16xf32>
    %33 = arith.subf %28, %32 : vector<16x16xf32>
    %34 = math.exp %33 : vector<16x16xf32>
    %cst_14 = arith.constant dense<0.000000e+00> : vector<16xf32>
    %35 = vector.multi_reduction <add>, %34, %cst_14 [1] : vector<16x16xf32> to vector<16xf32>
    %36 = vector.shape_cast %35 : vector<16xf32> to vector<16x1xf32>
    %37 = math.log %36 : vector<16x1xf32>
    %38 = arith.addf %37, %31 : vector<16x1xf32>
    %39 = tpu.iota {dimensions = array<i32: 1>} : vector<16x16xi32>
    %40 = vector.broadcast %29 : vector<16x1xi32> to vector<16x16xi32>
    %41 = arith.cmpi eq, %39, %40 : vector<16x16xi32>
    %cst_15 = arith.constant 9.062500e-01 : f32
    %cst_16 = arith.constant 6.250000e-03 : f32
    %42 = vector.broadcast %cst_15 : f32 to vector<16x16xf32>
    %43 = vector.broadcast %cst_16 : f32 to vector<16x16xf32>
    %44 = arith.select %41, %42, %43 : vector<16x16xi1>, vector<16x16xf32>
    %45 = arith.mulf %44, %28 : vector<16x16xf32>
    %cst_17 = arith.constant dense<0.000000e+00> : vector<16xf32>
    %46 = vector.multi_reduction <add>, %45, %cst_17 [1] : vector<16x16xf32> to vector<16xf32>
    %47 = vector.shape_cast %46 : vector<16xf32> to vector<16x1xf32>
    %48 = arith.subf %38, %47 : vector<16x1xf32>
    %49 = vector.shape_cast %48 : vector<16x1xf32> to vector<1x16x1xf32>
    %cst_18 = arith.constant dense<0.000000e+00> : vector<1xf32>
    %50 = vector.multi_reduction <add>, %49, %cst_18 [1, 2] : vector<1x16x1xf32> to vector<1xf32>
    %51 = vector.shape_cast %50 : vector<1xf32> to vector<1x1x1xf32>
    %52 = vector.extract %51[0, 0, 0] : f32 from vector<1x1x1xf32>
    %c0_19 = arith.constant 0 : index
    %c0_20 = arith.constant 0 : index
    %53 = vector.load %arg6[%c0_19, %c0_20] : memref<8x32xf32, #tpu.memory_space<vmem>>, vector<8x32xf32>
    %cst_21 = arith.constant 1.000000e+00 : f32
    %54 = vector.broadcast %cst_21 : f32 to vector<8x32xf32>
    %55 = arith.subf %54, %53 : vector<8x32xf32>
    %cst_22 = arith.constant 0.000000e+00 : f32
    %56 = vector.broadcast %cst_22 : f32 to vector<8x32xf32>
    %57 = arith.maximumf %55, %56 : vector<8x32xf32>
    %58 = vector.shape_cast %57 : vector<8x32xf32> to vector<1x8x32xf32>
    %cst_23 = arith.constant dense<0.000000e+00> : vector<1xf32>
    %59 = vector.multi_reduction <add>, %58, %cst_23 [1, 2] : vector<1x8x32xf32> to vector<1xf32>
    %60 = vector.shape_cast %59 : vector<1xf32> to vector<1x1x1xf32>
    %61 = vector.extract %60[0, 0, 0] : f32 from vector<1x1x1xf32>
    %c0_24 = arith.constant 0 : index
    %c0_25 = arith.constant 0 : index
    %c0_26 = arith.constant 0 : index
    %62 = vector.load %arg7[%c0_24, %c0_25, %c0_26] : memref<1x8x128xf32, #tpu.memory_space<vmem>>, vector<1x8x128xf32>
    %cst_27 = arith.constant 1.250000e-01 : f32
    %63 = arith.mulf %cst_27, %27 : f32
    %cst_28 = arith.constant 6.250000e-02 : f32
    %64 = arith.mulf %cst_28, %52 : f32
    %65 = arith.addf %63, %64 : f32
    %cst_29 = arith.constant 0.00117187505 : f32
    %66 = arith.mulf %cst_29, %61 : f32
    %67 = arith.addf %65, %66 : f32
    %68 = vector.broadcast %67 : f32 to vector<1x8x128xf32>
    %69 = arith.addf %62, %68 : vector<1x8x128xf32>
    %c0_30 = arith.constant 0 : index
    %c0_31 = arith.constant 0 : index
    %c0_32 = arith.constant 0 : index
    %70 = vector.load %arg7[%c0_30, %c0_31, %c0_32] : memref<1x8x128xf32, #tpu.memory_space<vmem>>, vector<1x8x128xf32>
    tpu.vector_store %arg7[%c0_30, %c0_31, %c0_32], %69 {strides = array<i32>} : memref<1x8x128xf32, #tpu.memory_space<vmem>>, vector<1x8x128xf32>,
    return
  }
  func.func @transform_0(%arg0: i32, %arg1: i32) -> (i32, i32) {
    %c1_i32 = arith.constant 1 : i32
    %0 = arith.muli %arg0, %c1_i32 : i32
    %1 = arith.addi %0, %arg1 : i32
    %c0_i32 = arith.constant 0 : i32
    %c0_i32_0 = arith.constant 0 : i32
    return %1, %c0_i32 : i32, i32
  }
  func.func @transform_1(%arg0: i32, %arg1: i32) -> (i32, i32) {
    %c1_i32 = arith.constant 1 : i32
    %0 = arith.muli %arg0, %c1_i32 : i32
    %1 = arith.addi %0, %arg1 : i32
    %c0_i32 = arith.constant 0 : i32
    %c0_i32_0 = arith.constant 0 : i32
    return %1, %c0_i32 : i32, i32
  }
  func.func @transform_2(%arg0: i32, %arg1: i32) -> (i32, i32) {
    %c1_i32 = arith.constant 1 : i32
    %0 = arith.muli %arg0, %c1_i32 : i32
    %1 = arith.addi %0, %arg1 : i32
    %c0_i32 = arith.constant 0 : i32
    %c0_i32_0 = arith.constant 0 : i32
    return %1, %c0_i32 : i32, i32
  }
  func.func @transform_3(%arg0: i32, %arg1: i32) -> (i32, i32) {
    %c1_i32 = arith.constant 1 : i32
    %0 = arith.muli %arg0, %c1_i32 : i32
    %1 = arith.addi %0, %arg1 : i32
    %c0_i32 = arith.constant 0 : i32
    %c0_i32_0 = arith.constant 0 : i32
    return %1, %c0_i32 : i32, i32
  }
  func.func @transform_4(%arg0: i32, %arg1: i32) -> (i32, i32) {
    %c1_i32 = arith.constant 1 : i32
    %0 = arith.muli %arg0, %c1_i32 : i32
    %1 = arith.addi %0, %arg1 : i32
    %c0_i32 = arith.constant 0 : i32
    %c0_i32_0 = arith.constant 0 : i32
    return %1, %c0_i32 : i32, i32
  }
  func.func @transform_5(%arg0: i32, %arg1: i32) -> (i32, i32, i32) {
    %c0_i32 = arith.constant 0 : i32
    %c0_i32_0 = arith.constant 0 : i32
    %c0_i32_1 = arith.constant 0 : i32
    return %arg0, %c0_i32, %c0_i32_0 : i32, i32, i32
  }
}

</mosaic_0001>

<bundles_post_ra>
// kernel: tpu_custom_call.1
= control target key start
LH: loop header
LB: loop body
LE: loop exit
PB: predicated region body
PF: predicated region fallthrough
CT: control target
= control target key end

     0   :  { %vm123_vm0 = vcmask 130048   ;;  %v334_v5 = vmov 0   ;;  %s413_s0 = inlined_call_operand.vmem [shape: f32[8,16], index: 0, kind: input, shape index: {}]   ;;  %s414_s1 = inlined_call_operand.vmem [shape: s32[8,1], index: 1, kind: input, shape index: {}]   ;;  %s415_s2 = inlined_call_operand.vmem [shape: f32[16,16], index: 2, kind: input, shape index: {}]   ;;  %s416_s3 = inlined_call_operand.vmem [shape: s32[16,1], index: 3, kind: input, shape index: {}]   ;;  %s417_s4 = inlined_call_operand.vmem [shape: f32[8,32], index: 4, kind: input, shape index: {}]   ;;  %s418_s5 = inlined_call_operand.hbm [shape: f32[1,8,128], index: 5, kind: output, shape index: {}]  }
   0x1   :  { %v159_v0 = vld [vmem:[%s415_s2] sm:$0xff]  ;;  %v160_v1 = vld [vmem:[%s415_s2 + $0x8] sm:$0xff]  ;;  %296 = vset.pattern.permute.xlu1 %v334_v5  ;;  %297 = vset.pattern.permute.xlu0 %v334_v5 }
   0x2   :  { %v121_v2 = vld [vmem:[%s413_s0] sm:$0xff]  ;;  %v163_v3 = vsel %vm123_vm0, %v159_v0, -inf }
   0x3   :  { %v124_v4 = vsel %vm123_vm0, %v121_v2, -inf  ;;  %164 = vmax.xlane.f32.xlu0 %v163_v3 }
   0x4   :  { %125 = vmax.xlane.f32.xlu1 %v124_v4 }
   0x5   :  { %10 = vsyncpa [#allocation3], 0  ;;  %v166_v6 = vsel %vm123_vm0, %v160_v1, -inf  ;;  %v161_v7 = vld [vmem:[%s416_s3] sm:$0xff]  ;;  %v162_v9 = vld [vmem:[%s416_s3 + $0x8] sm:$0xff]  ;;  %v136_v17 = vlaneseq  ;;  %vm222_vm4 = vcmask 261120  }
   0x6   :  { %v122_v8 = vld [vmem:[%s414_s1] sm:$0xff]  ;;  %v335_v24 = vmov 0.00625   ;;  %vm148_vm5 = vcmask 7168   ;;  %s336_s10 = smov [#allocation2]  }
   0x7   :  { %167 = vmax.xlane.f32.xlu0 %v166_v6  ;;  %v137_v20 = vand.u32 127, %v136_v17  ;;  %v219_v40 = vld [vmem:[%s417_s4] sm:$0xff]  ;;  %s248_s11 = sshll.u32 %s336_s10, 4  ;;  %s249_s11 = int_to_ptr.vmem [resolvable:$true] %s248_s11 }
   0x8   :  { %v220_v41 = vsub.f32 1.0, %v219_v40  ;;  %s310_s12 = scalar_lea.vmem %s249_s11, 128  ;;  %p315_p1 = scmp.lt.s32.totalorder %s249_s11, %s249_s11 }
   0x9   :  { %p311_p0 = scmp.ne.s32.totalorder %s249_s11, %s310_s12  ;;  %p316_p2 = scmp.lt.s32.totalorder %s310_s12, %s310_s12 }
   0xa   :  { %v221_v42 = vmax.f32 %v220_v41, 0.0 }
   0xb   :  { %p317_p3 = por %p316_p2, %p315_p1 }
   0xc   :  { %v223_v43 = vsel %vm222_vm4, %v221_v42, 0.0 }
   0xd   :  { %p318_p4 = pnand %p317_p3, %p311_p0 }
  0x15   :  { %188 = vperm.xlu1 %296, %v161_v7  }
  0x19   :  { %139 = vperm.xlu1 %296, %v122_v8  }
  0x1d   :  { %191 = vperm.xlu0 %297, %v162_v9  }
  0x90   :  { %v165_v10 = vpop.xlane.xlu0 %164 }
  0x91   :  { %v388_v11 = vpop.xlane.xlu1 %125  ;;  %v169_v12 = vsub.f32 %v159_v0, %v165_v10 }
  0x92   :  { %v127_v13 = vsub.f32 %v121_v2, %v388_v11 }
  0x93   :  { %v171_v14 = vmul.f32 1.442695, %v169_v12 }
  0x94   :  { %v128_v15 = vmul.f32 1.442695, %v127_v13  ;;  %v168_v16 = vpop.xlane.xlu0 %167 }
  0x95   :  { %298 = vpow2.f32 %v171_v14  ;;  %v170_v18 = vsub.f32 %v160_v1, %v168_v16  ;;  %v189_v21 = vpop.permute.xlu1 %188 }
  0x96   :  { %300 = vpow2.f32 %v128_v15  ;;  %vm193_vm1 = vcmp.eq.s32.totalorder %v137_v20, %v189_v21 }
  0x97   :  { %v173_v19 = vmul.f32 1.442695, %v170_v18  ;;  %v195_v25 = vsel %vm193_vm1, 0.90625, %v335_v24 }
  0x98   :  { %v197_v29 = vmul.f32 %v195_v25, %v159_v0 }
  0x99   :  { %302 = vpow2.f32 %v173_v19  ;;  %v140_v31 = vpop.permute.xlu1 %139 }
  0x9a   :  { %vm141_vm3 = vcmp.eq.s32.totalorder %v137_v20, %v140_v31  ;;  %v199_v34 = vsel %vm123_vm0, %v197_v29, 0.0 }
  0x9b   :  { %v142_v36 = vsel %vm141_vm3, 0.90625, %v335_v24 }
  0x9c   :  { %v192_v22 = vpop.permute.xlu0 %191  ;;  %v143_v38 = vmul.f32 %v142_v36, %v121_v2 }
  0x9d   :  { %vm194_vm2 = vcmp.eq.s32.totalorder %v137_v20, %v192_v22 }
  0x9e   :  { %v196_v32 = vsel %vm194_vm2, 0.90625, %v335_v24  ;;  %v144_v39 = vsel %vm123_vm0, %v143_v38, 0.0 }
  0x9f   :  { %v299_v23 = vpop.eup %298  ;;  %v198_v35 = vmul.f32 %v196_v32, %v160_v1 }
  0xa0   :  { %v301_v26 = vpop.eup %300  ;;  %v175_v27 = vsel %vm123_vm0, %v299_v23, 0.0 }
  0xa1   :  { %176 = vadd.xlane.f32.xlu1 %v175_v27  ;;  %v130_v28 = vsel %vm123_vm0, %v301_v26, 0.0  ;;  %v202_v37 = vsel %vm123_vm0, %v198_v35, 0.0 }
  0xa3   :  { %v303_v30 = vpop.eup %302 }
  0xa4   :  { %v178_v33 = vsel %vm123_vm0, %v303_v30, 0.0 }
  0xa5   :  { %179 = vadd.xlane.f32.xlu0 %v178_v33  ;;  %131 = vadd.xlane.f32.xlu1 %v130_v28 }
  0xa9   :  { %200 = vadd.xlane.f32.xlu1 %v199_v34  ;;  %224 = vadd.xlane.f32.xlu0 %v223_v43 }
  0xad   :  { %203 = vadd.xlane.f32.xlu1 %v202_v37 }
  0xb1   :  { %145 = vadd.xlane.f32.xlu1 %v144_v39 }
 0x12e   :  { %v177_v44 = vpop.xlane.xlu1 %176 }
 0x12f   :  { %304 = vlog2.f32 %v177_v44 }
 0x132   :  { %v180_v45 = vpop.xlane.xlu0 %179  ;;  %v132_v46 = vpop.xlane.xlu1 %131 }
 0x133   :  { %306 = vlog2.f32 %v180_v45 }
 0x134   :  { %308 = vlog2.f32 %v132_v46 }
 0x136   :  { %v201_v47 = vpop.xlane.xlu1 %200  ;;  %v225_v2 = vpop.xlane.xlu0 %224 }
 0x137   :  { %v226_v3 = vrot.slane %v225_v2, 4 }
 0x139   :  { %v305_v48 = vpop.eup %304  ;;  %v227_v4 = vadd.f32 %v226_v3, %v225_v2 }
 0x13a   :  { %v182_v49 = vmul.f32 0.6931472, %v305_v48  ;;  %v204_v50 = vpop.xlane.xlu1 %203 }
 0x13b   :  { %v228_v8 = vrot.slane %v227_v4, 2 }
 0x13c   :  { %v185_v55 = vadd.f32 %v182_v49, %v165_v10 }
 0x13d   :  { %v307_v51 = vpop.eup %306  ;;  %v229_v14 = vadd.f32 %v228_v8, %v227_v4 }
 0x13e   :  { %v309_v52 = vpop.eup %308  ;;  %v184_v53 = vmul.f32 0.6931472, %v307_v51  ;;  %v146_v59 = vpop.xlane.xlu1 %145  ;;  %v205_v60 = vsub.f32 %v185_v55, %v201_v47 }
 0x13f   :  { %v134_v54 = vmul.f32 0.6931472, %v309_v52  ;;  %v230_v19 = vrot.slane %v229_v14, 1 }
 0x140   :  { %v186_v56 = vadd.f32 %v184_v53, %v168_v16  ;;  %v207_v0 = vsel %vm148_vm5, %v205_v60, 0.0 }
 0x141   :  { %v135_v57 = vadd.f32 %v134_v54, %v388_v11  ;;  %v231_v22 = vadd.f32 %v230_v19, %v229_v14 }
 0x142   :  { %v206_v58 = vsub.f32 %v186_v56, %v204_v50 }
 0x143   :  { %v147_v61 = vsub.f32 %v135_v57, %v146_v59 }
 0x144   :  { %v208_v63 = vsel %vm148_vm5, %v206_v58, 0.0 }
 0x145   :  { %v149_v62 = vsel %vm148_vm5, %v147_v61, 0.0  ;;  %v209_v1 = vadd.f32 %v208_v63, %v207_v0 }
 0x146   :  { %150 = vadd.xlane.f32.xlu1 %v149_v62 }
 0x14a   :  { %210 = vadd.xlane.f32.xlu1 %v209_v1 }
 0x1d3   :  { %v151_v5 = vpop.xlane.xlu1 %150 }
 0x1d4   :  { %v152_v6 = vrot.slane %v151_v5, 4 }
 0x1d6   :  { %v153_v7 = vadd.f32 %v152_v6, %v151_v5 }
 0x1d7   :  { %v211_v9 = vpop.xlane.xlu1 %210 }
 0x1d8   :  { %v154_v10 = vrot.slane %v153_v7, 2  ;;  %v212_v11 = vrot.slane %v211_v9, 4 }
 0x1da   :  { %v213_v12 = vadd.f32 %v212_v11, %v211_v9  ;;  %v155_v13 = vadd.f32 %v154_v10, %v153_v7 }
 0x1dc   :  { %v214_v15 = vrot.slane %v213_v12, 2  ;;  %v156_v16 = vrot.slane %v155_v13, 1 }
 0x1de   :  { %v215_v17 = vadd.f32 %v214_v15, %v213_v12  ;;  %v157_v18 = vadd.f32 %v156_v16, %v155_v13 }
 0x1e0   :  { %286 = vpush %v157_v18  ;;  %v216_v20 = vrot.slane %v215_v17, 1 }
 0x1e2   :  { %v217_v21 = vadd.f32 %v216_v20, %v215_v17 }
 0x1e4   :  { %288 = vpush %v217_v21 }
 0x1e5   :  { %290 = vpush %v231_v22 }
 0x211   :  { %s287_s4 = spop %286 }
 0x212   :  { %s234_s28 = smul.f32 0.125, %s287_s4 }
 0x215   :  { %s289_s29 = spop %288 }
 0x216   :  { %s235_s30 = smul.f32 0.0625, %s289_s29  ;;  %s291_s6 = spop %290 }
 0x217   :  { %s237_s8 = smul.f32 0.001171875, %s291_s6 }
 0x218   :  { %s236_s7 = sadd.f32 %s235_s30, %s234_s28 }
 0x21a   :  { %s238_s9 = sadd.f32 %s237_s8, %s236_s7 }
 0x21c   :  { %v239_v23 = vstv %s238_s9 }
 0x21d   :  { %241 = vst [vmem:[#allocation2] sm:$0xff] %v239_v23 }
 0x21e   :  { %321 = shalt.err (!%p318_p4)
}
 0x21f   :  { %s322_s15 = scalar_lea.hbm %s418_s5, 128 }
 0x220   :  { %p323_p5 = scmp.ne.s32.totalorder %s418_s5, %s322_s15  ;;  %p326_p6 = scmp.lt.u32.totalorder %s322_s15, %s418_s5 }
 0x222   :  { %p328_p7 = pnand %p326_p6, %p323_p5 }
 0x224   :  { %331 = shalt.err (!%p328_p7)
}
 0x225   :  { %251 = dma.vmem_to_hbm [thread:$0]  %s249_s11, 128, %s418_s5, [#allocation3]  }
 0x226   :  { %332 = dma.done.wait [#allocation3], 128  }
 0x227   :  { %333 = vsyncadd [#allocation3], 4294967168 }
 0x228   :  { %255 = vsyncpa [#allocation3], 1 }

</bundles_post_ra>
